<compile_context>
chip_gen: v7x
topology: tpu7x:2x2x1
jax: 0.10.0
libtpu: 0.0.40
codegen_flags: <defaults>
</compile_context>

<pallas_src>
import functools

import jax
import jax.numpy as jnp
from jax import lax
from jax.experimental import pallas as pl
from jax.experimental.pallas import tpu as pltpu


def _round_up(x, m):
    return ((x + m - 1) // m) * m


def _vmem_limit_bytes():
    # v5e/v6e: 128 MiB physical -> ~100 MiB scoped; v7x: 64 MiB -> ~51 MiB.
    try:
        cap = pltpu.get_tpu_info().vmem_capacity_bytes
    except Exception:
        cap = 64 * 1024 * 1024
    return min(int(cap * 0.8), 100 * 1024 * 1024)


# ----------------------------------------------------------------------------
# Fused Pallas kernel: in-kernel embedding gather + synthetic base encoder + lm_head
# ----------------------------------------------------------------------------
# TODO(synk): the real module wraps a pretrained HF causal-LM base_model; here it is a
# deterministic single-layer synthetic encoder (matmul + tanh + mask) feeding the LM head.
def fused_actor_critic_kernel(ids_ref, mask_ref, emb_hbm, wb_ref, bb_ref,
                              wlm_ref, logits_ref, emb_buf, h_scratch, sem):
    i = pl.program_id(0)          # M-tile index (parallel)
    j = pl.program_id(1)          # V-tile index (inner, sequential)
    tm = emb_buf.shape[0]

    @pl.when(j == 0)
    def _():
        # ---- in-kernel embedding gather ----
        # ids live in SMEM (scalar prefetch); rows of the f32 embedding table are DMA'd
        # straight from HBM into VMEM.  f32 rows keep the DMA at clean 32-bit sublane
        # granularity (no packed-bf16 odd-row writes).
        base = i * tm

        def _start(r, carry):
            row = ids_ref[base + r]
            pltpu.make_async_copy(emb_hbm.at[pl.ds(row, 1)],
                                  emb_buf.at[pl.ds(r, 1)], sem).start()
            return carry
        lax.fori_loop(0, tm, _start, 0)

        def _wait(r, carry):
            row = ids_ref[base + r]
            pltpu.make_async_copy(emb_hbm.at[pl.ds(row, 1)],
                                  emb_buf.at[pl.ds(r, 1)], sem).wait()
            return carry
        lax.fori_loop(0, tm, _wait, 0)

        # ---- base encoder for this M tile: bf16 MXU inputs, f32 accumulation ----
        a = emb_buf[...].astype(jnp.bfloat16)
        h = jnp.dot(a, wb_ref[...], preferred_element_type=jnp.float32)
        # tanh + masking in f32 (portable across v5e which has no bf16 VPU/EUP).
        # TODO(synk): on v6e/v7x a bf16 tanh epilogue would halve EUP/VPU work here.
        h = jnp.tanh(h + bb_ref[...]) * mask_ref[...]
        h_scratch[...] = h.astype(jnp.bfloat16)

    # ---- LM head: hidden resident in VMEM scratch x streamed w_lm V-tile ----
    # bf16 logits store halves the dominant HBM writeback (f32 MXU accumulation kept).
    # TODO(synk): fusing the downstream log-softmax / token-logprob gather would avoid
    # writing the [M, Vp] slab entirely; fp8 w_lm is a further option on v7x.
    logits_ref[...] = jnp.dot(h_scratch[...], wlm_ref[...],
                              preferred_element_type=jnp.float32).astype(logits_ref.dtype)


def run_actor_critic(ids_flat, mask2d, embed, w_base, b_base, w_lm_p, *, tn, tm=512):
    """ids_flat: [M] int32; embed: [V, H] f32; w_lm_p: [H, Vp] bf16 with Vp % tn == 0."""
    M = ids_flat.shape[0]
    H = embed.shape[1]
    Vp = w_lm_p.shape[1]
    assert Vp % tn == 0

    tm = min(tm, _round_up(M, 8))
    # v7x has 2 TensorCores: keep >=2 M tiles when possible so the "parallel" axis
    # actually shards (v5e/v6e single-TC unaffected).
    if M > 8 and pl.cdiv(M, tm) < 2:
        tm = _round_up(pl.cdiv(M, 2), 8)
    Mp = _round_up(M, tm)
    if Mp != M:
        ids_flat = jnp.pad(ids_flat, (0, Mp - M))          # pad with token 0 (valid row)
        mask2d = jnp.pad(mask2d, ((0, Mp - M), (0, 0)))    # padded rows masked to 0

    grid = (Mp // tm, Vp // tn)

    # TODO(synk): for large H (>=4096) the resident (H,H) w_base should be
    # single-buffered (pl.Buffered(1)) or streamed in H-chunks to fit v7x's 64 MiB VMEM;
    # w_lm could take pl.Buffered(3) if DMA is exposed at j boundaries.
    logits_p = pl.pallas_call(
        fused_actor_critic_kernel,
        out_shape=jax.ShapeDtypeStruct((Mp, Vp), jnp.bfloat16),
        grid_spec=pltpu.PrefetchScalarGridSpec(
            num_scalar_prefetch=1,                              # ids -> SMEM
            grid=grid,
            in_specs=[
                pl.BlockSpec((tm, 1), lambda i, j, ids: (i, 0)),    # mask M-tile
                pl.BlockSpec(memory_space=pl.ANY),                  # embed table (HBM)
                pl.BlockSpec((H, H), lambda i, j, ids: (0, 0)),     # w_base (resident)
                pl.BlockSpec((1, H), lambda i, j, ids: (0, 0)),     # b_base
                pl.BlockSpec((H, tn), lambda i, j, ids: (0, j)),    # w_lm V-tile (streamed)
            ],
            out_specs=pl.BlockSpec((tm, tn), lambda i, j, ids: (i, j)),
            scratch_shapes=[
                pltpu.VMEM((tm, H), jnp.float32),    # gathered embedding rows
                pltpu.VMEM((tm, H), jnp.bfloat16),   # hidden state (resident over j)
                pltpu.SemaphoreType.DMA(()),         # gather DMA semaphore
            ],
        ),
        compiler_params=pltpu.CompilerParams(
            # M tiles shard across TensorCores; V must stay sequential (j==0 encoder
            # phase + hidden residency in scratch).
            dimension_semantics=("parallel", "arbitrary"),
            vmem_limit_bytes=_vmem_limit_bytes(),
        ),
    )(ids_flat, mask2d, embed, w_base, b_base, w_lm_p)

    return logits_p[:M]


@functools.partial(jax.jit, static_argnames=("tn", "tm", "vocab_size"))
def _actor_critic_forward(input_ids, attention_mask, embed, w_base, b_base,
                          w_lm_padded, w_value, b_value, *, tn, tm, vocab_size):
    B, S = input_ids.shape
    M = B * S

    ids_flat = input_ids.reshape(M).astype(jnp.int32)
    mask2d = attention_mask.astype(jnp.float32).reshape(M, 1)

    logits2d = run_actor_critic(ids_flat, mask2d, embed, w_base, b_base,
                                w_lm_padded, tn=tn, tm=tm)
    logits = logits2d[:, :vocab_size].reshape(B, S, vocab_size)

    # Value head: torch uses last_hidden_state[:, -1, :].  Only B rows are needed, so
    # the O(B*H^2) sliver is recomputed in plain JAX instead of hauling an [M,128] f32
    # value stream out of the kernel.
    emb_last = jnp.take(embed, input_ids[:, -1], axis=0)                    # [B, H] f32
    h_last = jnp.tanh(emb_last @ w_base.astype(jnp.float32) + b_base)
    h_last = h_last * attention_mask[:, -1:].astype(jnp.float32)
    value = (h_last @ w_value.astype(jnp.float32) + b_value).reshape(-1)    # [B]

    return logits, value


# ----------------------------------------------------------------------------
# ActorCritic (Pallas) — forward pass only
# ----------------------------------------------------------------------------
class ActorCriticPallas:
    def __init__(self, vocab_size, hidden_size, eos_token_id, key, tn=512, tm=512):
        self.vocab_size = vocab_size
        self.hidden_size = hidden_size
        self.eos_token_id = eos_token_id
        self.tm = tm

        # V tile: 512 for large vocabs (HBM roofline + 2x256 MXU); whole 128-rounded
        # vocab if small.  w_lm is padded once at init so non-multiple vocabs work.
        vp128 = _round_up(vocab_size, 128)
        self.tn = vp128 if vp128 <= tn else tn
        self.vocab_padded = _round_up(vocab_size, self.tn)

        k0, k1, k2, k3, k4 = jax.random.split(key, 5)
        # embed kept f32 so the in-kernel row DMA stays at 32-bit sublane granularity;
        # matmul weights bf16 (MXU inputs / halved HBM traffic); biases f32.
        self.embed = 0.02 * jax.random.normal(k0, (vocab_size, hidden_size), jnp.float32)
        self.w_base = (0.05 * jax.random.normal(
            k1, (hidden_size, hidden_size), jnp.float32)).astype(jnp.bfloat16)
        self.b_base = jnp.zeros((1, hidden_size), jnp.float32)
        w_lm = (0.05 * jax.random.normal(
            k2, (hidden_size, vocab_size), jnp.float32)).astype(jnp.bfloat16)
        self.w_lm_padded = jnp.pad(w_lm, ((0, 0), (0, self.vocab_padded - vocab_size)))
        self.w_value = (0.05 * jax.random.normal(
            k3, (hidden_size, 1), jnp.float32)).astype(jnp.bfloat16)
        self.b_value = 0.01 * jax.random.normal(k4, (1, 1), jnp.float32)

    def forward(self, input_ids, attention_mask):
        # mirror torch: promote 1-D inputs to a batch of 1
        if input_ids.ndim == 1:
            input_ids = input_ids[None, :]
            attention_mask = attention_mask[None, :]

        logits, value = _actor_critic_forward(
            input_ids, attention_mask, self.embed, self.w_base, self.b_base,
            self.w_lm_padded, self.w_value, self.b_value,
            tn=self.tn, tm=self.tm, vocab_size=self.vocab_size)

        # computed (as in torch forward) but not used in the return
        sequence_lengths = jnp.maximum(
            jnp.sum(input_ids != self.eos_token_id, axis=-1) - 1, 0)
        del sequence_lengths

        return logits, value


# ----------------------------------------------------------------------------
if __name__ == "__main__":
    key = jax.random.PRNGKey(0)
    k_param, k_ids = jax.random.split(key)

    B, S, H, V = 2, 8, 32, 256
    EOS = 0

    model = ActorCriticPallas(vocab_size=V, hidden_size=H, eos_token_id=EOS, key=k_param)

    input_ids = jax.random.randint(k_ids, (B, S), 1, V, dtype=jnp.int32)
    attention_mask = jnp.ones((B, S), dtype=jnp.int32)

    logits, value = model.forward(input_ids, attention_mask)
    logits = jax.block_until_ready(logits)
    value = jax.block_until_ready(value)

    # pure-JAX reference with matching numerics (bf16 matmul inputs, f32 accumulation)
    emb_f32 = jnp.take(model.embed, input_ids.reshape(-1), axis=0)
    emb_bf = emb_f32.astype(jnp.bfloat16).astype(jnp.float32)
    h_f32 = jnp.tanh(emb_bf @ model.w_base.astype(jnp.float32) + model.b_base)
    h_f32 = h_f32 * attention_mask.astype(jnp.float32).reshape(-1, 1)
    h_bf = h_f32.astype(jnp.bfloat16).astype(jnp.float32)
    logits_ref = (h_bf @ model.w_lm_padded.astype(jnp.float32))[:, :V].reshape(B, S, V)

    h_last_ref = jnp.tanh(emb_f32.reshape(B, S, H)[:, -1, :]
                          @ model.w_base.astype(jnp.float32) + model.b_base)
    h_last_ref = h_last_ref * attention_mask[:, -1:].astype(jnp.float32)
    value_ref = (h_last_ref @ model.w_value.astype(jnp.float32)
                 + model.b_value).reshape(-1)

    assert logits.shape == (B, S, V) and value.shape == (B,)
    assert jnp.allclose(logits.astype(jnp.float32), logits_ref, atol=2e-3)
    assert jnp.allclose(value, value_ref, atol=2e-3)
    print("KERNEL_OK")
</pallas_src>

<mosaic_0001>
module attributes {stable_mosaic.version = 11 : i64} {
  func.func @fused_actor_critic_kernel(%arg0: i32, %arg1: i32, %arg2: memref<16xi32, #tpu.memory_space<smem>>, %arg3: memref<8x1xf32, #tpu.memory_space<vmem>>, %arg4: memref<256x32xf32, #tpu.memory_space<any>>, %arg5: memref<32x32xbf16, #tpu.memory_space<vmem>>, %arg6: memref<1x32xf32, #tpu.memory_space<vmem>>, %arg7: memref<32x256xbf16, #tpu.memory_space<vmem>>, %arg8: memref<8x256xbf16, #tpu.memory_space<vmem>>, %arg9: memref<8x32xf32, #tpu.memory_space<vmem>>, %arg10: memref<8x32xbf16, #tpu.memory_space<vmem>>, %arg11: memref<!tpu.dma_semaphore, #tpu.memory_space<semaphore_mem>>) attributes {dimension_semantics = [#tpu.dimension_semantics<parallel>, #tpu.dimension_semantics<arbitrary>], iteration_bounds = array<i64: 2, 1>, scalar_prefetch = 1 : i64, scratch_operands = 3 : i64, tpu.core_type = #tpu.core_type<tc>, window_params = [{transform_indices = @transform_0, window_bounds = array<i64: 8, 1>}, {}, {pipeline_mode = #tpu.pipeline_mode<synchronous>, transform_indices = @transform_2, window_bounds = array<i64: 32, 32>}, {pipeline_mode = #tpu.pipeline_mode<synchronous>, transform_indices = @transform_3, window_bounds = array<i64: 1, 32>}, {transform_indices = @transform_4, window_bounds = array<i64: 32, 256>}, {transform_indices = @transform_5, window_bounds = array<i64: 8, 256>}]} {
    %c0_i32 = arith.constant 0 : i32
    %0 = arith.cmpi eq, %arg1, %c0_i32 : i32
    %1 = arith.extui %0 : i1 to i32
    %c0_i32_0 = arith.constant 0 : i32
    %2 = arith.cmpi ne, %1, %c0_i32_0 : i32
    scf.if %2 {
      %c8_i32 = arith.constant 8 : i32
      %8 = arith.muli %arg0, %c8_i32 : i32
      %c0_i32_6 = arith.constant 0 : i32
      %c8_i32_7 = arith.constant 8 : i32
      %9 = arith.addi %c0_i32_6, %c8_i32_7 : i32
      %c1_i32 = arith.constant 1 : i32
      scf.for %arg12 = %c0_i32_6 to %9 step %c1_i32  : i32 {
        %24 = arith.addi %8, %arg12 : i32
        %25 = arith.index_cast %24 : i32 to index
        %26 = memref.load %arg2[%25] : memref<16xi32, #tpu.memory_space<smem>>
        %c0_i32_24 = arith.constant 0 : i32
        %27 = tpu.memref_slice %arg4[%26, %c0_i32_24] : memref<256x32xf32, #tpu.memory_space<any>> -> memref<1x32xf32, #tpu.memory_space<any>>
        %c0_i32_25 = arith.constant 0 : i32
        %28 = tpu.memref_slice %arg9[%arg12, %c0_i32_25] : memref<8x32xf32, #tpu.memory_space<vmem>> -> memref<1x32xf32, #tpu.memory_space<vmem>>
        tpu.enqueue_dma source(%27 : memref<1x32xf32, #tpu.memory_space<any>>) target(%28 : memref<1x32xf32, #tpu.memory_space<vmem>>) target_semaphore(%arg11 : memref<!tpu.dma_semaphore, #tpu.memory_space<semaphore_mem>>)
      }
      %c8_i32_8 = arith.constant 8 : i32
      %c0_i32_9 = arith.constant 0 : i32
      %c8_i32_10 = arith.constant 8 : i32
      %10 = arith.addi %c0_i32_9, %c8_i32_10 : i32
      %c1_i32_11 = arith.constant 1 : i32
      scf.for %arg12 = %c0_i32_9 to %10 step %c1_i32_11  : i32 {
        %24 = arith.addi %8, %arg12 : i32
        %25 = arith.index_cast %24 : i32 to index
        %26 = memref.load %arg2[%25] : memref<16xi32, #tpu.memory_space<smem>>
        %c0_i32_24 = arith.constant 0 : i32
        %27 = tpu.memref_slice %arg4[%26, %c0_i32_24] : memref<256x32xf32, #tpu.memory_space<any>> -> memref<1x32xf32, #tpu.memory_space<any>>
        %c0_i32_25 = arith.constant 0 : i32
        %28 = tpu.memref_slice %arg9[%arg12, %c0_i32_25] : memref<8x32xf32, #tpu.memory_space<vmem>> -> memref<1x32xf32, #tpu.memory_space<vmem>>
        tpu.wait_dma2 semaphore(%arg11 : memref<!tpu.dma_semaphore, #tpu.memory_space<semaphore_mem>>) src(%27 : memref<1x32xf32, #tpu.memory_space<any>>) dst(%28 : memref<1x32xf32, #tpu.memory_space<vmem>>)
      }
      %c8_i32_12 = arith.constant 8 : i32
      %c0_13 = arith.constant 0 : index
      %c0_14 = arith.constant 0 : index
      %11 = vector.load %arg9[%c0_13, %c0_14] : memref<8x32xf32, #tpu.memory_space<vmem>>, vector<8x32xf32>
      %12 = arith.truncf %11 : vector<8x32xf32> to vector<8x32xbf16>
      %c0_15 = arith.constant 0 : index
      %c0_16 = arith.constant 0 : index
      %13 = vector.load %arg5[%c0_15, %c0_16] : memref<32x32xbf16, #tpu.memory_space<vmem>>, vector<32x32xbf16>
      %cst_17 = arith.constant dense<0.000000e+00> : vector<8x32xf32>
      %14 = tpu.matmul %12, %13, %cst_17 {dimension_numbers = #tpu.dot_dimension_numbers<[1], [0], [0], [1], [0, 0, 1, 1], [], []>} : vector<8x32xbf16>, vector<32x32xbf16>, vector<8x32xf32> -> vector<8x32xf32>
      %c0_18 = arith.constant 0 : index
      %c0_19 = arith.constant 0 : index
      %15 = vector.load %arg6[%c0_18, %c0_19] : memref<1x32xf32, #tpu.memory_space<vmem>>, vector<1x32xf32>
      %16 = vector.broadcast %15 : vector<1x32xf32> to vector<8x32xf32>
      %17 = arith.addf %14, %16 : vector<8x32xf32>
      %18 = math.tanh %17 : vector<8x32xf32>
      %c0_20 = arith.constant 0 : index
      %c0_21 = arith.constant 0 : index
      %19 = vector.load %arg3[%c0_20, %c0_21] : memref<8x1xf32, #tpu.memory_space<vmem>>, vector<8x1xf32>
      %20 = vector.broadcast %19 : vector<8x1xf32> to vector<8x32xf32>
      %21 = arith.mulf %18, %20 : vector<8x32xf32>
      %22 = arith.truncf %21 : vector<8x32xf32> to vector<8x32xbf16>
      %c0_22 = arith.constant 0 : index
      %c0_23 = arith.constant 0 : index
      %23 = vector.load %arg10[%c0_22, %c0_23] : memref<8x32xbf16, #tpu.memory_space<vmem>>, vector<8x32xbf16>
      tpu.vector_store %arg10[%c0_22, %c0_23], %22 {strides = array<i32>} : memref<8x32xbf16, #tpu.memory_space<vmem>>, vector<8x32xbf16>,
    } else {
    }
    %c0 = arith.constant 0 : index
    %c0_1 = arith.constant 0 : index
    %3 = vector.load %arg10[%c0, %c0_1] : memref<8x32xbf16, #tpu.memory_space<vmem>>, vector<8x32xbf16>
    %c0_2 = arith.constant 0 : index
    %c0_3 = arith.constant 0 : index
    %4 = vector.load %arg7[%c0_2, %c0_3] : memref<32x256xbf16, #tpu.memory_space<vmem>>, vector<32x256xbf16>
    %cst = arith.constant dense<0.000000e+00> : vector<8x256xf32>
    %5 = tpu.matmul %3, %4, %cst {dimension_numbers = #tpu.dot_dimension_numbers<[1], [0], [0], [1], [0, 0, 1, 1], [], []>} : vector<8x32xbf16>, vector<32x256xbf16>, vector<8x256xf32> -> vector<8x256xf32>
    %6 = arith.truncf %5 : vector<8x256xf32> to vector<8x256xbf16>
    %c0_4 = arith.constant 0 : index
    %c0_5 = arith.constant 0 : index
    %7 = vector.load %arg8[%c0_4, %c0_5] : memref<8x256xbf16, #tpu.memory_space<vmem>>, vector<8x256xbf16>
    tpu.vector_store %arg8[%c0_4, %c0_5], %6 {strides = array<i32>} : memref<8x256xbf16, #tpu.memory_space<vmem>>, vector<8x256xbf16>,
    return
  }
  func.func @transform_0(%arg0: i32, %arg1: i32, %arg2: memref<16xi32, #tpu.memory_space<smem>>) -> (i32, i32) {
    %c0_i32 = arith.constant 0 : i32
    %c0_i32_0 = arith.constant 0 : i32
    return %arg0, %c0_i32 : i32, i32
  }
  func.func @transform_2(%arg0: i32, %arg1: i32, %arg2: memref<16xi32, #tpu.memory_space<smem>>) -> (i32, i32) {
    %c0_i32 = arith.constant 0 : i32
    %c0_i32_0 = arith.constant 0 : i32
    %c0_i32_1 = arith.constant 0 : i32
    return %c0_i32, %c0_i32_0 : i32, i32
  }
  func.func @transform_3(%arg0: i32, %arg1: i32, %arg2: memref<16xi32, #tpu.memory_space<smem>>) -> (i32, i32) {
    %c0_i32 = arith.constant 0 : i32
    %c0_i32_0 = arith.constant 0 : i32
    %c0_i32_1 = arith.constant 0 : i32
    return %c0_i32, %c0_i32_0 : i32, i32
  }
  func.func @transform_4(%arg0: i32, %arg1: i32, %arg2: memref<16xi32, #tpu.memory_space<smem>>) -> (i32, i32) {
    %c0_i32 = arith.constant 0 : i32
    %c0_i32_0 = arith.constant 0 : i32
    return %c0_i32, %arg1 : i32, i32
  }
  func.func @transform_5(%arg0: i32, %arg1: i32, %arg2: memref<16xi32, #tpu.memory_space<smem>>) -> (i32, i32) {
    %c0_i32 = arith.constant 0 : i32
    return %arg0, %arg1 : i32, i32
  }
}

</mosaic_0001>

<bundles_post_ra>
// kernel: _actor_critic_forward.1
= control target key start
LH: loop header
LB: loop body
LE: loop exit
PB: predicated region body
PF: predicated region fallthrough
CT: control target
= control target key end

     0   :  { %s1030_s0 = inlined_call_operand.vmem [shape: s32[16], index: 0, kind: input, shape index: {}]   ;;  %s1031_s1 = inlined_call_operand.vmem [shape: f32[16,1], index: 1, kind: input, shape index: {}]   ;;  %s1032_s2 = inlined_call_operand.vmem [shape: f32[256,32], index: 2, kind: input, shape index: {}]   ;;  %s1033_s3 = inlined_call_operand.vmem [shape: bf16[32,32], index: 3, kind: input, shape index: {}]   ;;  %s1034_s4 = inlined_call_operand.vmem [shape: f32[1,32], index: 4, kind: input, shape index: {}]   ;;  %s1035_s5 = inlined_call_operand.vmem [shape: bf16[32,256], index: 5, kind: input, shape index: {}]   ;;  %s1036_s6 = inlined_call_operand.hbm [shape: bf16[16,256], index: 6, kind: output, shape index: {}]  }
   0x1   :  { %s11_s23 = sshll.u32 %s1030_s0, 4  ;;  %s12_s23 = int_to_ptr.vmem [resolvable:$true] %s11_s23 }
   0x2   :  { %s722_s24 = scalar_lea.vmem %s12_s23, 16  ;;  %p727_p1 = scmp.lt.s32.totalorder %s12_s23, %s12_s23 }
   0x3   :  { %p723_p0 = scmp.ne.s32.totalorder %s12_s23, %s722_s24  ;;  %p728_p2 = scmp.lt.s32.totalorder %s722_s24, %s722_s24 }
   0x5   :  { %p729_p3 = por %p728_p2, %p727_p1 }
   0x7   :  { %p730_p4 = pnand %p729_p3, %p723_p0 }
   0x9   :  { %733 = shalt.err (!%p730_p4)  }
   0xa   :  { %s834_s25 = smov [#allocation6]  }
   0xb   :  { %14 = dma.vmem_to_smem %s12_s23, 16, %s834_s25, [#allocation5] }
   0xc   :  { %794 = dma.done.wait [#allocation5], 16 }
   0xd   :  { %795 = vsyncadd [#allocation5], 4294967280 }
   0xe   :  { %16 = sfence }
   0xf   :  { %17 = vsyncpa [#allocation8], 0 }
  0x10   :  { %19 = vsyncpa [#allocation8 + $0x1], 0  ;;  %s877_s26 = smov 0   ;;  %s879_s27 = smov 0  }
  0x11   :  { %s881_s0 = smov 0   ;;  %s883_s28 = smov 0  }
  0x12   :  { %s885_s29 = smov 0   ;;  %s887_s30 = smov 0  }
  0x13 LB: > { %s598_s7 = sadd.s32 4294967295, %s824_s30   ;;  %s599_s8 = sadd.s32 4294967294, %s824_s30   ;;  %s824_s30 = sphi %s887_s30, %s25_s30   ;;  %s820_s29 = sphi %s885_s29, %s1045_s29   ;;  %s816_s28 = sphi %s883_s28, %s1044_s28   ;;  %s812_s0 = sphi %s881_s0, %s1043_s0   ;;  %s808_s27 = sphi %s879_s27, %s1042_s27   ;;  %s804_s26 = sphi %s877_s26, %s1041_s26  }
  0x14   : > { %s37_s9 = sadd.s32 1, %s820_s29  ;;  %s140_s10 = sadd.s32 1, %s812_s0 }
  0x15   : > { %p39_p5 = scmp.ge.s32.totalorder %s37_s9, 2  ;;  %p150_p6 = scmp.ne.s32.totalorder %s812_s0, %s808_s27 }
  0x16   : > { %p151_p7 = scmp.eq.s32.totalorder %s598_s7, 1  ;;  %p156_p8 = scmp.ne.s32.totalorder %s808_s27, %s804_s26 }
  0x17   : > { %s1047_s9 = smov (%p39_p5, %s37_s9), 0  ;;  %p157_p10 = scmp.eq.s32.totalorder %s599_s8, 1 }
  0x18   : > { %p917_p9 = por %p151_p7, %p150_p6  ;;  %s135_s12 = ssub.s32 %s820_s29, %s1047_s9 }
  0x19   : > { %p603_p11 = scmp.ge.s32.totalorder %s824_s30, 1  ;;  %p138_p12 = scmp.eq.s32.totalorder %s135_s12, 0 }
  0x1a   : > { %p924_p13 = por %p157_p10, %p156_p8  ;;  %p197_p0 = scmp.lt.s32.totalorder %s824_s30, 3 }
  0x1b   : > { %s930_s14 = scalar_select %p138_p12, %s812_s0, %s140_s10  }
  0x1c   : > { %p198_p1 = pnand %p603_p11, %p197_p0 }
  0x1d   : > { %s1037_s15 = sand.u32 (!%p198_p1), 1, %s808_s27   ;;  %p227_p2 = scmp.lt.s32.totalorder (!%p198_p1), %s816_s28, 1 }
  0x1e   : > { %201 = sbr.rel (%p198_p1) target bundleno = 539 (0x21b), region = 36  ;;  %s936_s16 = sshll.u32 (!%p198_p1), %s1037_s15, 3 }
  0x1f   : > { %s606_s17 = sshll.u32 (!%p198_p1), %s816_s28, 3  ;;  %s226_s23 = scalar_lea.vmem (!%p198_p1), [#allocation7], %s936_s16 }
  0x20   : > { %s826_s24 = smov (!%p198_p1), 0  }
  0x25   : > { %s228_s18 = scalar_select %p227_p2, %s816_s28, 1 }
  0x27   : > { %s605_s19 = sshll.u32 %s228_s18, 3 }
  0x28   : > { %s943_s22 = scalar_lea.vmem %s1031_s1, %s605_s19 }
  0x29 LB: >> { %s250_s25 = sadd.s32 %s828_s24, %s606_s17  ;;  %s253_s15 = scalar_lea.vmem [#allocation2], %s828_s24  ;;  %s828_s24 = sphi %s826_s24, %s249_s24  }
  0x2a   : >> { %s251_s7 = sld [smem:[#allocation6 + %s250_s25]] }
  0x30   : >> { %s252_s12 = scalar_lea.vmem %s1032_s2, %s251_s7 }
  0x31   : >> { %v271_v0 = vld [vmem:[%s252_s12] sm:$0x1] }
  0x32   : >> { %272 = vst [vmem:[%s253_s15] sm:$0x1] %v271_v0 }
  0x33   : >> { %297 = vsyncadd [#allocation4], 16  ;;  %s249_s24 = sadd.s32 1, %s828_s24  }
  0x34   : >> { %p246_p3 = scmp.ge.s32.totalorder %s249_s24, 8  }
  0x35   : > { %s830_s18 = smov (%p246_p3), 0  }
  0x36   : > { %248 = sbr.rel (!%p246_p3) target bundleno = 41 (0x29), region = 134 }
  0x3d LB: >> { %796 = dma.done.wait [#allocation4], 16  ;;  %s832_s18 = sphi %s830_s18, %s303_s18  }
  0x3e   : >> { %797 = vsyncadd [#allocation4], 4294967280  ;;  %s303_s18 = sadd.s32 1, %s832_s18  }
  0x3f   : >> { %p300_p4 = scmp.ge.s32.totalorder %s303_s18, 8  }
  0x40   : > { %v712_v1 = vld [vmem:[%s1033_s3] sm:$0xff] (%p300_p4)   ;;  %v835_v2 = vmov (%p300_p4), 0.0   ;;  %v713_v3 = vld [vmem:[%s1033_s3 + $0x8] sm:$0xff] (%p300_p4)   ;;  %vm836_vm0 = vmmov (%p300_p4), 0   ;;  %v837_v6 = vmov (%p300_p4), 0   ;;  %vm334_vm1 = vcmask (%p300_p4), 261120  }
  0x41   : > { %302 = sbr.rel (!%p300_p4) target bundleno = 61 (0x3d), region = 145  ;;  %628 = vmatprep.subr.bf16.mxu0 (%p300_p4), %v835_v2  ;;  %632 = vmatprep.mubr.msk.bf16.mxu0 (%p300_p4), %vm836_vm0, %v835_v2  ;;  %v309_v4 = vld [vmem:[#allocation2] sm:$0xff] (%p300_p4)  ;;  %v717_v10 = vld [vmem:[%s1035_s5 + $0x14] ss:$8 sps:$4 sm:$0xff] (%p300_p4)   ;;  %v719_v11 = vld [vmem:[%s1035_s5 + $0x10] ss:$8 sps:$4 sm:$0xff] (%p300_p4)  }
  0x42   : > { %629 = vmatpush3.bf16.msra.mxu0 (%p300_p4), %v712_v1  ;;  %v379_v5 = vld [vmem:[%s943_s22] sm:$0xff] (%p300_p4)  ;;  %711 = vset.pattern.permute.xlu0 (%p300_p4), %v837_v6  ;;  %v310_v7 = vpack.c.bf16 (%p300_p4), %v309_v4, %v309_v4  ;;  %vm387_vm2 = vcmask (%p300_p4), 257024   ;;  %s624_s20 = sshll.u32 (%p300_p4), %s816_s28, 7  ;;  %s485_s15 = sshll.u32 (%p300_p4), %s226_s23, 4  ;;  %s981_s15 = int_to_ptr.vmem [resolvable:$true] %s485_s15 }
  0x43   : > { %630 = vmatprep.subr.bf16.mxu0 (%p300_p4), %v835_v2  ;;  %382 = vperm.xlu0 (%p300_p4), %711, %v379_v5   ;;  %v714_v8 = vld [vmem:[%s1035_s5 + $0x4] ss:$8 sps:$4 sm:$0xff] (%p300_p4)   ;;  %v716_v9 = vld [vmem:[%s1035_s5] ss:$8 sps:$4 sm:$0xff] (%p300_p4)   ;;  %s979_s24 = scalar_lea.hbm (%p300_p4), %s1036_s6, %s624_s20  ;;  %s1040_s28 = sand.u32 (%p300_p4), 1, %s808_s27  }
  0x44   : > { %450 = vmatprep.mubr.bf16.mxu1 (%p300_p4), %v837_v6  ;;  %418 = vmatprep.subr.bf16.mxu1 (%p300_p4), %v714_v8  ;;  %v607_v12 = vld [vmem:[%s1034_s4] ss:$0 sm:$0xff] (%p300_p4)  ;;  %s469_s25 = scalar_lea.sflag (%p300_p4), [#allocation8], %s1040_s28  ;;  %s734_s7 = scalar_lea.vmem (%p300_p4), %s981_s15, 128 }
  0x45   : > { %419 = vmatpush1.bf16.msra.mxu1 (%p300_p4), %v716_v9  ;;  %p735_p5 = scmp.ne.s32.totalorder (%p300_p4), %s981_s15, %s734_s7  ;;  %s838_s22 = smov (%p300_p4), [#allocation7]  }
  0x46   : > { %631 = vmatpush3.bf16.msra.mxu0 (%p300_p4), %v713_v3  ;;  %420 = vmatprep.subr.bf16.mxu1 (%p300_p4), %v717_v10  ;;  %s738_s8 = sshll.u32 (%p300_p4), %s838_s22, 4  ;;  %s739_s8 = int_to_ptr.vmem [resolvable:$false] %s738_s8 }
  0x47   : > { %p736_p6 = pnand (%p300_p4), %p735_p5, %p917_p9  ;;  %s740_s10 = scalar_lea.vmem (%p300_p4), %s739_s8, 256 }
  0x48   : > { %p741_p8 = scmp.lt.s32.totalorder %s981_s15, %s739_s8  ;;  %p742_p10 = scmp.lt.s32.totalorder %s740_s10, %s734_s7 }
  0x49   : > { %633 = vmatmul.mubr.msk.bf16.vlgmr.msra.gmra.mrb[0].mxu0 %vm334_vm1, %v310_v7  ;;  %421 = vmatpush1.bf16.msra.mxu1 %v719_v11  ;;  %p737_p7 = pneg %p736_p6 }
  0x4a   : > { %p743_p11 = por %p742_p10, %p741_p8 }
  0x4c   : > { %p744_p12 = pnand %p743_p11, %p737_p7 }
  0xc2   : > { %v383_v18 = vpop.permute.xlu0 %382 }
 0x11c   : > { %v372_v13 = vpop.f32.mrb[0].mxu0 }
 0x11d   : > { %v373_v14 = vadd.f32 %v607_v12, %v372_v13  ;;  %v634_v15 = vpop.f32.mrb[1].mxu0 }
 0x11e   : > { %v375_v16 = vpop.f32.mrb[2].mxu0 }
 0x11f   : > { %720 = vtanh.f32 %v373_v14  ;;  %v635_v17 = vpop.f32.mrb[3].mxu0 }
 0x129   : > { %v721_v19 = vpop.eup %720 }
 0x12a   : > { %v385_v20 = vmul.f32 %v721_v19, %v383_v18 }
 0x12c   : > { %v386_v21 = vpack.c.bf16 %v385_v20, %v385_v20 }
 0x12e   : > { %388 = vst.msk [vmem:[#allocation3] sm:$0xf] %vm387_vm2, %v386_v21 }
 0x135   : > { %v389_v22 = vld [vmem:[#allocation3] sm:$0xf] }
 0x136   : > { %615 = vmatmul.mubr.msk.bf16.vlgmr.msra.gmra.mrb[0].mxu1 %vm334_vm1, %v389_v22 }
 0x209   : > { %v452_v23 = vpop.f32.mrb[0].mxu1 }
 0x20a   : > { %v454_v24 = vpop.f32.mrb[1].mxu1 }
 0x20b   : > { %v623_v25 = vpack.c.bf16 %v454_v24, %v452_v23  ;;  %v456_v26 = vpop.f32.mrb[2].mxu1 }
 0x20c   : > { %v457_v27 = vpop.f32.mrb[3].mxu1 }
 0x20d   : > { %467 = vst [vmem:[%s226_s23] sm:$0xff] %v623_v25 }
 0x20e   : > { %747 = shalt.err (!%p744_p12)
}
 0x20f   : > { %s748_s16 = scalar_lea.hbm %s979_s24, 128  ;;  %s752_s18 = scalar_lea.hbm %s1036_s6, 256 }
 0x210   : > { %p749_p0 = scmp.ne.s32.totalorder %s979_s24, %s748_s16  ;;  %p753_p3 = scmp.lt.u32.totalorder %s979_s24, %s1036_s6 }
 0x211   : > { %p754_p4 = scmp.lt.u32.totalorder %s752_s18, %s748_s16  ;;  %p756_p6 = scmp.lt.u32.totalorder %s748_s16, %s979_s24 }
 0x212   : > { %p750_p1 = pnand %p749_p0, %p917_p9 }
 0x213   : > { %p755_p5 = por %p754_p4, %p753_p3 }
 0x214   : > { %p751_p2 = pneg %p750_p1 }
 0x215   : > { %p757_p7 = por %p756_p6, %p755_p5 }
 0x217   : > { %p758_p8 = pnand %p757_p7, %p751_p2 }
 0x219   : > { %761 = shalt.err (!%p758_p8)
}
 0x21a   : > { %636 = dma.vmem_to_hbm [thread:$0]  (%p917_p9), %s981_s15, 128, %s979_s24, %s469_s25  }
 0x21b PF: > { %p642_p10 = scmp.ge.s32.totalorder %s824_s30, 2  ;;  %s497_s21 = sand.u32 1, %s804_s26  }
 0x21c   : > { %s498_s17 = scalar_lea.sflag [#allocation8], %s497_s21 }
 0x21d   : > { %p639_p11 = pnand %p642_p10, %p924_p13 }
 0x21f   : > { %799 = dma.done.wait (!%p639_p11), %s498_s17, 128  }
 0x220   : > { %801 = vsyncadd (!%p639_p11), %s498_s17, 4294967168  ;;  %s25_s30 = sadd.s32 1, %s824_s30   ;;  %s1041_s26 = smov %s808_s27 }
 0x221   : > { %p22_p12 = scmp.ge.s32.totalorder %s25_s30, 4   ;;  %s1042_s27 = smov %s812_s0 }
 0x222   : > { %s1043_s0 = smov %s930_s14  ;;  %s1044_s28 = smov %s820_s29 }
 0x223   : > { %s1045_s29 = smov %s1047_s9  ;;  %24 = sbr.rel (!%p22_p12) target bundleno = 19 (0x13), region = 156 }
 0x22a   :  { %503 = vsyncpa [#allocation8], 1 }
 0x22b   :  { %505 = vsyncpa [#allocation8 + $0x1], 1 }
 0x22c   :  { %506 = vsyncmov [#allocation4] }
 0x22f   :  { %s507_s11 = vpop.sfrf %506 }
 0x230   :  { %p622_p9 = scmp.ne.s32.totalorder %s507_s11, 0 }
 0x232   :  { %511 = shalt.err (%p622_p9)  }

</bundles_post_ra>
